<compile_context>
chip_gen: v7x
topology: tpu7x:2x2x1
jax: 0.10.0
libtpu: 0.0.40
codegen_flags: <defaults>
</compile_context>

<pallas_src>
import functools

import jax
import jax.numpy as jnp
from jax import lax
from jax.experimental import pallas as pl
from jax.experimental.pallas import tpu as pltpu


def _eres_kernel(W, masks_ref, x_ref, w1_ref, b1_ref, w2_ref, b2_ref,
                 w3_ref, b3_ref, o_ref):
    # Per grid step:
    #   masks_ref : (4, L)  compute dtype; rows = [ox=-1 ok, ox=+1 ok,
    #                                              oy=-1 ok, oy=+1 ok]
    #   x_ref     : (C, L)  lane-dense activations, L = block_n*H*W
    #   w1_ref    : (3, Cmid, 3*C)    b1_ref: (Cmid, 1) f32
    #   w2_ref    : (3, Cmid, 3*Cmid) b2_ref: (Cmid, 1) f32
    #   w3_ref    : (Cout, Cmid)      b3_ref: (Cout, 1) f32
    #   o_ref     : (Cout, L)
    C, L = x_ref.shape
    f32 = jnp.float32
    cd = x_ref.dtype

    m_xm = masks_ref[0:1, :]   # tap ox = -1 valid
    m_xp = masks_ref[1:2, :]   # tap ox = +1 valid
    m_ym = masks_ref[2:3, :]   # tap oy = -1 valid
    m_yp = masks_ref[3:4, :]   # tap oy = +1 valid

    x_in = x_ref[...]          # used by conv1 and the residual add

    def conv3x3(inp, w_ref, b_ref):
        # inp: (Cin, L).  One accumulating MXU dot per kernel row (3 taps,
        # K = 3*Cin) -> no 9x-activation concat temp.  Rolls are composed:
        # one oy roll per row, reused by the 3 ox taps (XLU-slot work).
        acc = None
        for gi, oy in enumerate((-1, 0, 1)):
            base = inp if oy == 0 else pltpu.roll(inp, (-(oy * W)) % L, axis=1)
            if oy == -1:
                base = base * m_ym
            elif oy == 1:
                base = base * m_yp
            taps = []
            for ox in (-1, 0, 1):
                t = base if ox == 0 else pltpu.roll(base, (-ox) % L, axis=1)
                if ox == -1:
                    t = t * m_xm
                elif ox == 1:
                    t = t * m_xp
                taps.append(t)
            group = jnp.concatenate(taps, axis=0)              # (3*Cin, L)
            part = jnp.dot(w_ref[gi], group,
                           preferred_element_type=f32)         # (Cout, L) f32
            acc = part if acc is None else acc + part
        return acc + b_ref[...]                                # bias once/step

    h1 = jnp.maximum(conv3x3(x_in, w1_ref, b1_ref), 0.0)       # f32 (Cmid, L)
    h2 = jnp.maximum(conv3x3(h1.astype(cd), w2_ref, b2_ref), 0.0)
    h3 = jnp.dot(w3_ref[...], h2.astype(cd),
                 preferred_element_type=f32) + b3_ref[...]     # 1x1 conv
    o_ref[...] = jnp.maximum(h3 + x_in.astype(f32), 0.0).astype(o_ref.dtype)


def _vmem_block_bytes(block_n, HW, C, Cmid, Cout, cbytes, obytes):
    # Rough per-step footprint: double-buffered in/out blocks + masks +
    # tap-group temps + f32 activation temps (acc/h1/h2).
    L = block_n * HW
    cmax = max(C, Cmid)
    return (2 * C * L * cbytes          # input block, double-buffered
            + 2 * Cout * L * obytes     # output block, double-buffered
            + 2 * 4 * L * cbytes        # masks
            + 5 * cmax * L * cbytes     # tap group + rolled temporaries
            + 3 * Cmid * L * 4)         # acc / h1 / h2 in f32


def _auto_block_n(N, HW, C, Cmid, Cout, cbytes, obytes, budget):
    # Largest block_n that (a) divides N, (b) keeps the lane block a multiple
    # of 128 (or the full extent), (c) fits the VMEM budget, and (d) still
    # leaves >= min(N, 4) grid steps for pipelining / v7x TC sharding.
    candidates = [d for d in range(1, N + 1)
                  if N % d == 0 and (d == N or (d * HW) % 128 == 0)]
    fitting = [d for d in candidates
               if _vmem_block_bytes(d, HW, C, Cmid, Cout, cbytes, obytes)
               <= budget]
    if not fitting:
        fitting = [min(candidates)]     # smallest legal block; see row-tiling TODO
    target_steps = min(N, 4)
    preferred = [d for d in fitting if N // d >= target_steps]
    return max(preferred) if preferred else max(fitting)


def eresidual_block(x_nchw, w1, b1, w2, b2, w3, b3, *, block_n=None,
                    compute_dtype=jnp.float32,
                    vmem_limit_bytes=48 * 1024 * 1024):
    """CARN EResidualBlock forward.

    x_nchw: (N, C, H, W).
    w1, w2: (Cout, Cin, 3, 3)  -- PyTorch Conv2d OIHW layout.
    w3:     (Cout, Cin) or (Cout, Cin, 1, 1) -- PyTorch 1x1 Conv2d layout.
    b1,b2,b3: (Cout,).
    Returns (N, C, H, W) in x's dtype.
    """
    N, C, H, W = x_nchw.shape
    if w3.ndim == 4:
        w3 = w3.reshape(w3.shape[0], w3.shape[1])
    Cmid = w1.shape[0]
    Cout = w3.shape[0]
    assert w1.shape == (Cmid, C, 3, 3)
    assert w2.shape == (Cmid, Cmid, 3, 3)
    assert w3.shape == (Cout, Cmid)
    assert Cout == C, "residual add requires in_channels == out_channels"
    HW = H * W

    cd = jnp.dtype(compute_dtype)
    f32 = jnp.float32
    out_dtype = x_nchw.dtype
    cbytes = cd.itemsize
    obytes = jnp.dtype(out_dtype).itemsize

    budget = vmem_limit_bytes // 2
    if block_n is None:
        block_n = _auto_block_n(N, HW, C, Cmid, Cout, cbytes, obytes, budget)
    assert N % block_n == 0
    assert block_n == N or (block_n * HW) % 128 == 0, (
        "lane block must be a multiple of 128 or the full batch*HW extent")
    steps = N // block_n
    Lb = block_n * HW

    # Lane-dense activation slab: (C, N*HW), images contiguous along lanes.
    # (Layout plumbing done wrapper-side so the kernel sees lane-dense slabs.)
    x_t = jnp.transpose(x_nchw.reshape(N, C, HW), (1, 0, 2))
    x_t = x_t.reshape(C, N * HW).astype(cd)

    # 3x3 weights -> (ky, Cout, kx*Cin), matching the kernel's tap order.
    def conv_w(w):
        o, i = w.shape[0], w.shape[1]
        return jnp.transpose(w, (2, 0, 3, 1)).reshape(3, o, 3 * i).astype(cd)

    w1_g = conv_w(w1.astype(f32))
    w2_g = conv_w(w2.astype(f32))
    w3_m = w3.astype(cd)
    b1c = b1.astype(f32).reshape(Cmid, 1)
    b2c = b2.astype(f32).reshape(Cmid, 1)
    b3c = b3.astype(f32).reshape(Cout, 1)

    # Precomputed SAME-padding border masks (grid-invariant, fetched once).
    ix = jnp.arange(HW, dtype=jnp.int32) % W
    iy = jnp.arange(HW, dtype=jnp.int32) // W
    masks_img = jnp.stack([ix >= 1, ix < W - 1, iy >= 1, iy < H - 1],
                          axis=0).astype(cd)                    # (4, HW)
    masks = jnp.tile(masks_img, (1, block_n))                   # (4, Lb)

    kernel = functools.partial(_eres_kernel, W)

    out_t = pl.pallas_call(
        kernel,
        out_shape=jax.ShapeDtypeStruct((Cout, N * HW), out_dtype),
        grid_spec=pltpu.PrefetchScalarGridSpec(
            num_scalar_prefetch=0,
            grid=(steps,),
            in_specs=[
                pl.BlockSpec((4, Lb), lambda t: (0, 0)),
                pl.BlockSpec((C, Lb), lambda t: (0, t)),
                pl.BlockSpec((3, Cmid, 3 * C), lambda t: (0, 0, 0)),
                pl.BlockSpec((Cmid, 1), lambda t: (0, 0)),
                pl.BlockSpec((3, Cmid, 3 * Cmid), lambda t: (0, 0, 0)),
                pl.BlockSpec((Cmid, 1), lambda t: (0, 0)),
                pl.BlockSpec((Cout, Cmid), lambda t: (0, 0)),
                pl.BlockSpec((Cout, 1), lambda t: (0, 0)),
            ],
            out_specs=pl.BlockSpec((Cout, Lb), lambda t: (0, t)),
        ),
        compiler_params=pltpu.CompilerParams(
            dimension_semantics=("parallel",),
            vmem_limit_bytes=vmem_limit_bytes),
    )(masks, x_t, w1_g, b1c, w2_g, b2c, w3_m, b3c)

    out = jnp.transpose(out_t.reshape(Cout, N, HW), (1, 0, 2))
    return out.reshape(N, Cout, H, W)


def _reference(x, w1, b1, w2, b2, w3, b3):
    """Pure-JAX reference (NCHW / OIHW, same layouts as PyTorch)."""
    dn = ("NCHW", "OIHW", "NCHW")
    o = lax.conv_general_dilated(x, w1, (1, 1), "SAME",
                                 dimension_numbers=dn) + b1[None, :, None, None]
    o = jnp.maximum(o, 0.0)
    o = lax.conv_general_dilated(o, w2, (1, 1), "SAME",
                                 dimension_numbers=dn) + b2[None, :, None, None]
    o = jnp.maximum(o, 0.0)
    o = lax.conv_general_dilated(o, w3[:, :, None, None], (1, 1), "SAME",
                                 dimension_numbers=dn) + b3[None, :, None, None]
    return jnp.maximum(o + x, 0.0)


if __name__ == "__main__":
    key = jax.random.PRNGKey(0)
    N, C, H, W = 2, 4, 16, 16            # in_channels == out_channels == 4
    Cmid = C

    k = jax.random.split(key, 8)
    x = jax.random.normal(k[0], (N, C, H, W), jnp.float32)

    # Deterministic parameter init, PyTorch-native layouts.
    fan1 = 3 * 3 * C
    w1 = jax.random.normal(k[1], (Cmid, C, 3, 3), jnp.float32) / jnp.sqrt(fan1)
    b1 = jax.random.normal(k[2], (Cmid,), jnp.float32) * 0.01
    fan2 = 3 * 3 * Cmid
    w2 = jax.random.normal(k[3], (Cmid, Cmid, 3, 3), jnp.float32) / jnp.sqrt(fan2)
    b2 = jax.random.normal(k[4], (Cmid,), jnp.float32) * 0.01
    w3 = jax.random.normal(k[5], (C, Cmid), jnp.float32) / jnp.sqrt(Cmid)
    b3 = jax.random.normal(k[6], (C,), jnp.float32) * 0.01

    ref = _reference(x, w1, b1, w2, b2, w3, b3)

    # f32 path: tight check against the f32 reference.
    out = eresidual_block(x, w1, b1, w2, b2, w3, b3)
    out = jax.block_until_ready(out)
    assert out.shape == (N, C, H, W)
    assert jnp.allclose(out, ref, atol=2e-4, rtol=2e-4)

    # bf16-operand path (v6e/v7x production setting): loose sanity check.
    out_bf16 = eresidual_block(x, w1, b1, w2, b2, w3, b3,
                               compute_dtype=jnp.bfloat16)
    out_bf16 = jax.block_until_ready(out_bf16)
    assert jnp.allclose(out_bf16, ref, atol=1e-1, rtol=1e-1)

    print("KERNEL_OK")
</pallas_src>

<mosaic_0001>
module attributes {stable_mosaic.version = 11 : i64} {
  func.func @_eres_kernel(%arg0: i32, %arg1: memref<4x256xf32, #tpu.memory_space<vmem>>, %arg2: memref<4x256xf32, #tpu.memory_space<vmem>>, %arg3: memref<3x4x12xf32, #tpu.memory_space<vmem>>, %arg4: memref<4x1xf32, #tpu.memory_space<vmem>>, %arg5: memref<3x4x12xf32, #tpu.memory_space<vmem>>, %arg6: memref<4x1xf32, #tpu.memory_space<vmem>>, %arg7: memref<4x4xf32, #tpu.memory_space<vmem>>, %arg8: memref<4x1xf32, #tpu.memory_space<vmem>>, %arg9: memref<4x256xf32, #tpu.memory_space<vmem>>) attributes {dimension_semantics = [#tpu.dimension_semantics<parallel>], iteration_bounds = array<i64: 2>, scalar_prefetch = 0 : i64, scratch_operands = 0 : i64, tpu.core_type = #tpu.core_type<tc>, window_params = [{pipeline_mode = #tpu.pipeline_mode<synchronous>, transform_indices = @transform_0, window_bounds = array<i64: 4, 256>}, {transform_indices = @transform_1, window_bounds = array<i64: 4, 256>}, {pipeline_mode = #tpu.pipeline_mode<synchronous>, transform_indices = @transform_2, window_bounds = array<i64: 3, 4, 12>}, {pipeline_mode = #tpu.pipeline_mode<synchronous>, transform_indices = @transform_3, window_bounds = array<i64: 4, 1>}, {pipeline_mode = #tpu.pipeline_mode<synchronous>, transform_indices = @transform_4, window_bounds = array<i64: 3, 4, 12>}, {pipeline_mode = #tpu.pipeline_mode<synchronous>, transform_indices = @transform_5, window_bounds = array<i64: 4, 1>}, {pipeline_mode = #tpu.pipeline_mode<synchronous>, transform_indices = @transform_6, window_bounds = array<i64: 4, 4>}, {pipeline_mode = #tpu.pipeline_mode<synchronous>, transform_indices = @transform_7, window_bounds = array<i64: 4, 1>}, {transform_indices = @transform_8, window_bounds = array<i64: 4, 256>}]} {
    %c0 = arith.constant 0 : index
    %c0_0 = arith.constant 0 : index
    %0 = vector.load %arg1[%c0, %c0_0] : memref<4x256xf32, #tpu.memory_space<vmem>>, vector<1x256xf32>
    %c1 = arith.constant 1 : index
    %c0_1 = arith.constant 0 : index
    %1 = vector.load %arg1[%c1, %c0_1] : memref<4x256xf32, #tpu.memory_space<vmem>>, vector<1x256xf32>
    %c2 = arith.constant 2 : index
    %c0_2 = arith.constant 0 : index
    %2 = vector.load %arg1[%c2, %c0_2] : memref<4x256xf32, #tpu.memory_space<vmem>>, vector<1x256xf32>
    %c3 = arith.constant 3 : index
    %c0_3 = arith.constant 0 : index
    %3 = vector.load %arg1[%c3, %c0_3] : memref<4x256xf32, #tpu.memory_space<vmem>>, vector<1x256xf32>
    %c0_4 = arith.constant 0 : index
    %c0_5 = arith.constant 0 : index
    %4 = vector.load %arg2[%c0_4, %c0_5] : memref<4x256xf32, #tpu.memory_space<vmem>>, vector<4x256xf32>
    %c16_i32 = arith.constant 16 : i32
    %5 = tpu.dynamic_rotate %4 by %c16_i32 dim 1 : vector<4x256xf32>, i32 -> vector<4x256xf32>
    %6 = vector.broadcast %2 : vector<1x256xf32> to vector<4x256xf32>
    %7 = arith.mulf %5, %6 : vector<4x256xf32>
    %c1_i32 = arith.constant 1 : i32
    %8 = tpu.dynamic_rotate %7 by %c1_i32 dim 1 : vector<4x256xf32>, i32 -> vector<4x256xf32>
    %9 = vector.broadcast %0 : vector<1x256xf32> to vector<4x256xf32>
    %10 = arith.mulf %8, %9 : vector<4x256xf32>
    %c255_i32 = arith.constant 255 : i32
    %11 = tpu.dynamic_rotate %7 by %c255_i32 dim 1 : vector<4x256xf32>, i32 -> vector<4x256xf32>
    %12 = vector.broadcast %1 : vector<1x256xf32> to vector<4x256xf32>
    %13 = arith.mulf %11, %12 : vector<4x256xf32>
    %14 = tpu.concatenate %10, %7, %13 in 0 : vector<4x256xf32>, vector<4x256xf32>, vector<4x256xf32> -> vector<12x256xf32>
    %c0_6 = arith.constant 0 : index
    %c0_7 = arith.constant 0 : index
    %c0_8 = arith.constant 0 : index
    %15 = vector.load %arg3[%c0_6, %c0_7, %c0_8] : memref<3x4x12xf32, #tpu.memory_space<vmem>>, vector<1x4x12xf32>
    %16 = vector.shape_cast %15 : vector<1x4x12xf32> to vector<4x12xf32>
    %cst = arith.constant dense<0.000000e+00> : vector<4x256xf32>
    %17 = tpu.matmul %16, %14, %cst {dimension_numbers = #tpu.dot_dimension_numbers<[1], [0], [0], [1], [0, 0, 1, 1], [], []>} : vector<4x12xf32>, vector<12x256xf32>, vector<4x256xf32> -> vector<4x256xf32>
    %c1_i32_9 = arith.constant 1 : i32
    %18 = tpu.dynamic_rotate %4 by %c1_i32_9 dim 1 : vector<4x256xf32>, i32 -> vector<4x256xf32>
    %19 = vector.broadcast %0 : vector<1x256xf32> to vector<4x256xf32>
    %20 = arith.mulf %18, %19 : vector<4x256xf32>
    %c255_i32_10 = arith.constant 255 : i32
    %21 = tpu.dynamic_rotate %4 by %c255_i32_10 dim 1 : vector<4x256xf32>, i32 -> vector<4x256xf32>
    %22 = vector.broadcast %1 : vector<1x256xf32> to vector<4x256xf32>
    %23 = arith.mulf %21, %22 : vector<4x256xf32>
    %24 = tpu.concatenate %20, %4, %23 in 0 : vector<4x256xf32>, vector<4x256xf32>, vector<4x256xf32> -> vector<12x256xf32>
    %c1_11 = arith.constant 1 : index
    %c0_12 = arith.constant 0 : index
    %c0_13 = arith.constant 0 : index
    %25 = vector.load %arg3[%c1_11, %c0_12, %c0_13] : memref<3x4x12xf32, #tpu.memory_space<vmem>>, vector<1x4x12xf32>
    %26 = vector.shape_cast %25 : vector<1x4x12xf32> to vector<4x12xf32>
    %cst_14 = arith.constant dense<0.000000e+00> : vector<4x256xf32>
    %27 = tpu.matmul %26, %24, %cst_14 {dimension_numbers = #tpu.dot_dimension_numbers<[1], [0], [0], [1], [0, 0, 1, 1], [], []>} : vector<4x12xf32>, vector<12x256xf32>, vector<4x256xf32> -> vector<4x256xf32>
    %28 = arith.addf %17, %27 : vector<4x256xf32>
    %c240_i32 = arith.constant 240 : i32
    %29 = tpu.dynamic_rotate %4 by %c240_i32 dim 1 : vector<4x256xf32>, i32 -> vector<4x256xf32>
    %30 = vector.broadcast %3 : vector<1x256xf32> to vector<4x256xf32>
    %31 = arith.mulf %29, %30 : vector<4x256xf32>
    %c1_i32_15 = arith.constant 1 : i32
    %32 = tpu.dynamic_rotate %31 by %c1_i32_15 dim 1 : vector<4x256xf32>, i32 -> vector<4x256xf32>
    %33 = vector.broadcast %0 : vector<1x256xf32> to vector<4x256xf32>
    %34 = arith.mulf %32, %33 : vector<4x256xf32>
    %c255_i32_16 = arith.constant 255 : i32
    %35 = tpu.dynamic_rotate %31 by %c255_i32_16 dim 1 : vector<4x256xf32>, i32 -> vector<4x256xf32>
    %36 = vector.broadcast %1 : vector<1x256xf32> to vector<4x256xf32>
    %37 = arith.mulf %35, %36 : vector<4x256xf32>
    %38 = tpu.concatenate %34, %31, %37 in 0 : vector<4x256xf32>, vector<4x256xf32>, vector<4x256xf32> -> vector<12x256xf32>
    %c2_17 = arith.constant 2 : index
    %c0_18 = arith.constant 0 : index
    %c0_19 = arith.constant 0 : index
    %39 = vector.load %arg3[%c2_17, %c0_18, %c0_19] : memref<3x4x12xf32, #tpu.memory_space<vmem>>, vector<1x4x12xf32>
    %40 = vector.shape_cast %39 : vector<1x4x12xf32> to vector<4x12xf32>
    %cst_20 = arith.constant dense<0.000000e+00> : vector<4x256xf32>
    %41 = tpu.matmul %40, %38, %cst_20 {dimension_numbers = #tpu.dot_dimension_numbers<[1], [0], [0], [1], [0, 0, 1, 1], [], []>} : vector<4x12xf32>, vector<12x256xf32>, vector<4x256xf32> -> vector<4x256xf32>
    %42 = arith.addf %28, %41 : vector<4x256xf32>
    %c0_21 = arith.constant 0 : index
    %c0_22 = arith.constant 0 : index
    %43 = vector.load %arg4[%c0_21, %c0_22] : memref<4x1xf32, #tpu.memory_space<vmem>>, vector<4x1xf32>
    %44 = vector.broadcast %43 : vector<4x1xf32> to vector<4x256xf32>
    %45 = arith.addf %42, %44 : vector<4x256xf32>
    %cst_23 = arith.constant 0.000000e+00 : f32
    %46 = vector.broadcast %cst_23 : f32 to vector<4x256xf32>
    %47 = arith.maximumf %45, %46 : vector<4x256xf32>
    %c16_i32_24 = arith.constant 16 : i32
    %48 = tpu.dynamic_rotate %47 by %c16_i32_24 dim 1 : vector<4x256xf32>, i32 -> vector<4x256xf32>
    %49 = vector.broadcast %2 : vector<1x256xf32> to vector<4x256xf32>
    %50 = arith.mulf %48, %49 : vector<4x256xf32>
    %c1_i32_25 = arith.constant 1 : i32
    %51 = tpu.dynamic_rotate %50 by %c1_i32_25 dim 1 : vector<4x256xf32>, i32 -> vector<4x256xf32>
    %52 = vector.broadcast %0 : vector<1x256xf32> to vector<4x256xf32>
    %53 = arith.mulf %51, %52 : vector<4x256xf32>
    %c255_i32_26 = arith.constant 255 : i32
    %54 = tpu.dynamic_rotate %50 by %c255_i32_26 dim 1 : vector<4x256xf32>, i32 -> vector<4x256xf32>
    %55 = vector.broadcast %1 : vector<1x256xf32> to vector<4x256xf32>
    %56 = arith.mulf %54, %55 : vector<4x256xf32>
    %57 = tpu.concatenate %53, %50, %56 in 0 : vector<4x256xf32>, vector<4x256xf32>, vector<4x256xf32> -> vector<12x256xf32>
    %c0_27 = arith.constant 0 : index
    %c0_28 = arith.constant 0 : index
    %c0_29 = arith.constant 0 : index
    %58 = vector.load %arg5[%c0_27, %c0_28, %c0_29] : memref<3x4x12xf32, #tpu.memory_space<vmem>>, vector<1x4x12xf32>
    %59 = vector.shape_cast %58 : vector<1x4x12xf32> to vector<4x12xf32>
    %cst_30 = arith.constant dense<0.000000e+00> : vector<4x256xf32>
    %60 = tpu.matmul %59, %57, %cst_30 {dimension_numbers = #tpu.dot_dimension_numbers<[1], [0], [0], [1], [0, 0, 1, 1], [], []>} : vector<4x12xf32>, vector<12x256xf32>, vector<4x256xf32> -> vector<4x256xf32>
    %c1_i32_31 = arith.constant 1 : i32
    %61 = tpu.dynamic_rotate %47 by %c1_i32_31 dim 1 : vector<4x256xf32>, i32 -> vector<4x256xf32>
    %62 = vector.broadcast %0 : vector<1x256xf32> to vector<4x256xf32>
    %63 = arith.mulf %61, %62 : vector<4x256xf32>
    %c255_i32_32 = arith.constant 255 : i32
    %64 = tpu.dynamic_rotate %47 by %c255_i32_32 dim 1 : vector<4x256xf32>, i32 -> vector<4x256xf32>
    %65 = vector.broadcast %1 : vector<1x256xf32> to vector<4x256xf32>
    %66 = arith.mulf %64, %65 : vector<4x256xf32>
    %67 = tpu.concatenate %63, %47, %66 in 0 : vector<4x256xf32>, vector<4x256xf32>, vector<4x256xf32> -> vector<12x256xf32>
    %c1_33 = arith.constant 1 : index
    %c0_34 = arith.constant 0 : index
    %c0_35 = arith.constant 0 : index
    %68 = vector.load %arg5[%c1_33, %c0_34, %c0_35] : memref<3x4x12xf32, #tpu.memory_space<vmem>>, vector<1x4x12xf32>
    %69 = vector.shape_cast %68 : vector<1x4x12xf32> to vector<4x12xf32>
    %cst_36 = arith.constant dense<0.000000e+00> : vector<4x256xf32>
    %70 = tpu.matmul %69, %67, %cst_36 {dimension_numbers = #tpu.dot_dimension_numbers<[1], [0], [0], [1], [0, 0, 1, 1], [], []>} : vector<4x12xf32>, vector<12x256xf32>, vector<4x256xf32> -> vector<4x256xf32>
    %71 = arith.addf %60, %70 : vector<4x256xf32>
    %c240_i32_37 = arith.constant 240 : i32
    %72 = tpu.dynamic_rotate %47 by %c240_i32_37 dim 1 : vector<4x256xf32>, i32 -> vector<4x256xf32>
    %73 = vector.broadcast %3 : vector<1x256xf32> to vector<4x256xf32>
    %74 = arith.mulf %72, %73 : vector<4x256xf32>
    %c1_i32_38 = arith.constant 1 : i32
    %75 = tpu.dynamic_rotate %74 by %c1_i32_38 dim 1 : vector<4x256xf32>, i32 -> vector<4x256xf32>
    %76 = vector.broadcast %0 : vector<1x256xf32> to vector<4x256xf32>
    %77 = arith.mulf %75, %76 : vector<4x256xf32>
    %c255_i32_39 = arith.constant 255 : i32
    %78 = tpu.dynamic_rotate %74 by %c255_i32_39 dim 1 : vector<4x256xf32>, i32 -> vector<4x256xf32>
    %79 = vector.broadcast %1 : vector<1x256xf32> to vector<4x256xf32>
    %80 = arith.mulf %78, %79 : vector<4x256xf32>
    %81 = tpu.concatenate %77, %74, %80 in 0 : vector<4x256xf32>, vector<4x256xf32>, vector<4x256xf32> -> vector<12x256xf32>
    %c2_40 = arith.constant 2 : index
    %c0_41 = arith.constant 0 : index
    %c0_42 = arith.constant 0 : index
    %82 = vector.load %arg5[%c2_40, %c0_41, %c0_42] : memref<3x4x12xf32, #tpu.memory_space<vmem>>, vector<1x4x12xf32>
    %83 = vector.shape_cast %82 : vector<1x4x12xf32> to vector<4x12xf32>
    %cst_43 = arith.constant dense<0.000000e+00> : vector<4x256xf32>
    %84 = tpu.matmul %83, %81, %cst_43 {dimension_numbers = #tpu.dot_dimension_numbers<[1], [0], [0], [1], [0, 0, 1, 1], [], []>} : vector<4x12xf32>, vector<12x256xf32>, vector<4x256xf32> -> vector<4x256xf32>
    %85 = arith.addf %71, %84 : vector<4x256xf32>
    %c0_44 = arith.constant 0 : index
    %c0_45 = arith.constant 0 : index
    %86 = vector.load %arg6[%c0_44, %c0_45] : memref<4x1xf32, #tpu.memory_space<vmem>>, vector<4x1xf32>
    %87 = vector.broadcast %86 : vector<4x1xf32> to vector<4x256xf32>
    %88 = arith.addf %85, %87 : vector<4x256xf32>
    %cst_46 = arith.constant 0.000000e+00 : f32
    %89 = vector.broadcast %cst_46 : f32 to vector<4x256xf32>
    %90 = arith.maximumf %88, %89 : vector<4x256xf32>
    %c0_47 = arith.constant 0 : index
    %c0_48 = arith.constant 0 : index
    %91 = vector.load %arg7[%c0_47, %c0_48] : memref<4x4xf32, #tpu.memory_space<vmem>>, vector<4x4xf32>
    %cst_49 = arith.constant dense<0.000000e+00> : vector<4x256xf32>
    %92 = tpu.matmul %91, %90, %cst_49 {dimension_numbers = #tpu.dot_dimension_numbers<[1], [0], [0], [1], [0, 0, 1, 1], [], []>} : vector<4x4xf32>, vector<4x256xf32>, vector<4x256xf32> -> vector<4x256xf32>
    %c0_50 = arith.constant 0 : index
    %c0_51 = arith.constant 0 : index
    %93 = vector.load %arg8[%c0_50, %c0_51] : memref<4x1xf32, #tpu.memory_space<vmem>>, vector<4x1xf32>
    %94 = vector.broadcast %93 : vector<4x1xf32> to vector<4x256xf32>
    %95 = arith.addf %92, %94 : vector<4x256xf32>
    %96 = arith.addf %95, %4 : vector<4x256xf32>
    %cst_52 = arith.constant 0.000000e+00 : f32
    %97 = vector.broadcast %cst_52 : f32 to vector<4x256xf32>
    %98 = arith.maximumf %96, %97 : vector<4x256xf32>
    %c0_53 = arith.constant 0 : index
    %c0_54 = arith.constant 0 : index
    %99 = vector.load %arg9[%c0_53, %c0_54] : memref<4x256xf32, #tpu.memory_space<vmem>>, vector<4x256xf32>
    tpu.vector_store %arg9[%c0_53, %c0_54], %98 {strides = array<i32>} : memref<4x256xf32, #tpu.memory_space<vmem>>, vector<4x256xf32>,
    return
  }
  func.func @transform_0(%arg0: i32) -> (i32, i32) {
    %c0_i32 = arith.constant 0 : i32
    %c0_i32_0 = arith.constant 0 : i32
    %c0_i32_1 = arith.constant 0 : i32
    return %c0_i32, %c0_i32_0 : i32, i32
  }
  func.func @transform_1(%arg0: i32) -> (i32, i32) {
    %c0_i32 = arith.constant 0 : i32
    %c0_i32_0 = arith.constant 0 : i32
    return %c0_i32, %arg0 : i32, i32
  }
  func.func @transform_2(%arg0: i32) -> (i32, i32, i32) {
    %c0_i32 = arith.constant 0 : i32
    %c0_i32_0 = arith.constant 0 : i32
    %c0_i32_1 = arith.constant 0 : i32
    %c0_i32_2 = arith.constant 0 : i32
    return %c0_i32, %c0_i32_0, %c0_i32_1 : i32, i32, i32
  }
  func.func @transform_3(%arg0: i32) -> (i32, i32) {
    %c0_i32 = arith.constant 0 : i32
    %c0_i32_0 = arith.constant 0 : i32
    %c0_i32_1 = arith.constant 0 : i32
    return %c0_i32, %c0_i32_0 : i32, i32
  }
  func.func @transform_4(%arg0: i32) -> (i32, i32, i32) {
    %c0_i32 = arith.constant 0 : i32
    %c0_i32_0 = arith.constant 0 : i32
    %c0_i32_1 = arith.constant 0 : i32
    %c0_i32_2 = arith.constant 0 : i32
    return %c0_i32, %c0_i32_0, %c0_i32_1 : i32, i32, i32
  }
  func.func @transform_5(%arg0: i32) -> (i32, i32) {
    %c0_i32 = arith.constant 0 : i32
    %c0_i32_0 = arith.constant 0 : i32
    %c0_i32_1 = arith.constant 0 : i32
    return %c0_i32, %c0_i32_0 : i32, i32
  }
  func.func @transform_6(%arg0: i32) -> (i32, i32) {
    %c0_i32 = arith.constant 0 : i32
    %c0_i32_0 = arith.constant 0 : i32
    %c0_i32_1 = arith.constant 0 : i32
    return %c0_i32, %c0_i32_0 : i32, i32
  }
  func.func @transform_7(%arg0: i32) -> (i32, i32) {
    %c0_i32 = arith.constant 0 : i32
    %c0_i32_0 = arith.constant 0 : i32
    %c0_i32_1 = arith.constant 0 : i32
    return %c0_i32, %c0_i32_0 : i32, i32
  }
  func.func @transform_8(%arg0: i32) -> (i32, i32) {
    %c0_i32 = arith.constant 0 : i32
    %c0_i32_0 = arith.constant 0 : i32
    return %c0_i32, %arg0 : i32, i32
  }
}

</mosaic_0001>

<bundles_post_ra>
// kernel: tpu_custom_call.1
= control target key start
LH: loop header
LB: loop body
LE: loop exit
PB: predicated region body
PF: predicated region fallthrough
CT: control target
= control target key end

     0   :  { %13 = vsyncpa [#allocation3], 0  ;;  %s2056_s0 = inlined_call_operand.hbm [shape: f32[4,256], index: 0, kind: input, shape index: {}]   ;;  %s2057_s1 = inlined_call_operand.vmem [shape: f32[4,512], index: 1, kind: input, shape index: {}]   ;;  %s2058_s2 = inlined_call_operand.hbm [shape: f32[3,4,12], index: 2, kind: input, shape index: {}]   ;;  %s2059_s3 = inlined_call_operand.vmem [shape: f32[4,1], index: 3, kind: input, shape index: {}]   ;;  %s2060_s4 = inlined_call_operand.vmem [shape: f32[3,4,12], index: 4, kind: input, shape index: {}]   ;;  %s2061_s5 = inlined_call_operand.vmem [shape: f32[4,1], index: 5, kind: input, shape index: {}]   ;;  %s2062_s6 = inlined_call_operand.vmem [shape: f32[4,4], index: 6, kind: input, shape index: {}]   ;;  %s2063_s7 = inlined_call_operand.vmem [shape: f32[4,1], index: 7, kind: input, shape index: {}]   ;;  %s2064_s8 = inlined_call_operand.hbm [shape: f32[4,512], index: 8, kind: output, shape index: {}]  }
   0x1   :  { %14 = vsyncpa [#allocation6], 0 }
   0x2   :  { %15 = vsyncpa [#allocation4], 0 }
   0x3   :  { %17 = vsyncpa [#allocation4 + $0x1], 0  ;;  %s1619_s27 = smov 0   ;;  %s1621_s28 = smov 0  }
   0x4   :  { %s1623_s29 = smov 0   ;;  %s1625_s30 = smov 0  }
   0x5 LB: > { %s1640_s9 = sadd.s32 4294967295, %s1560_s30   ;;  %s1277_s10 = sadd.s32 4294967294, %s1560_s30   ;;  %s1560_s30 = sphi %s1625_s30, %s2084_s30   ;;  %s1556_s29 = sphi %s1623_s29, %s2083_s29   ;;  %s1552_s28 = sphi %s1621_s28, %s2082_s28   ;;  %s1548_s27 = sphi %s1619_s27, %s2081_s27  }
   0x6   : > { %s1644_s11 = sadd.s32 1, %s1560_s30   ;;  %s203_s12 = sadd.s32 1, %s1556_s29 }
   0x7   : > { %s200_s13 = ssub.s32 %s1560_s30, %s1644_s11  ;;  %p213_p0 = scmp.ne.s32.totalorder %s1556_s29, %s1552_s28 }
   0x8   : > { %p201_p1 = scmp.eq.s32.totalorder %s200_s13, 0  ;;  %p214_p2 = scmp.eq.s32.totalorder %s1640_s9, 1 }
   0x9   : > { %p219_p3 = scmp.ne.s32.totalorder %s1552_s28, %s1548_s27  ;;  %p220_p4 = scmp.eq.s32.totalorder %s1277_s10, 1 }
   0xa   : > { %s1655_s14 = scalar_select %p201_p1, %s1556_s29, %s203_s12  }
   0xb   : > { %p1657_p5 = por %p214_p2, %p213_p0  ;;  %p1661_p6 = por %p220_p4, %p219_p3 }
   0xc   : > { %p1278_p7 = scmp.ge.s32.totalorder %s1560_s30, 1  ;;  %p227_p8 = scmp.lt.s32.totalorder %s1560_s30, 3 }
   0xd   : > { %s2068_s15 = scalar_select %p1657_p5, 1, 0 }
   0xe   : > { %s2069_s16 = scalar_select %p1661_p6, 1, 0 }
   0xf   : > { %p2065_p9 = scmp.eq.s32.totalorder %s1640_s9, 0  ;;  %p1668_p10 = pnand %p1278_p7, %p227_p8 }
  0x10   : > { %s1562_s18 = smov [#allocation2]   ;;  %s1563_s20 = smov [#allocation5]  }
  0x11   : > { %s2070_s17 = scalar_select %p1668_p10, 1, 0 }
  0x12   : > { %s240_s19 = sshll.u32 %s1562_s18, 4  ;;  %p1371_p11 = pneg %p1668_p10  ;;  %s241_s19 = int_to_ptr.vmem [resolvable:$true] %s240_s19 }
  0x13   : > { %s250_s21 = sshll.u32 %s1563_s20, 4  ;;  %s1434_s25 = scalar_lea.hbm %s2056_s0, 128  ;;  %s1680_s21 = int_to_ptr.vmem [resolvable:$true] %s250_s21 }
  0x14   : > { %p1676_p12 = pnand %p2065_p9, %p1371_p11  ;;  %p1435_p13 = scmp.ne.s32.totalorder %s2056_s0, %s1434_s25 }
  0x15   : > { %p1441_p3 = scmp.lt.u32.totalorder %s1434_s25, %s2056_s0 }
  0x16   : > { %p1436_p0 = pneg %p1676_p12 }
  0x18   : > { %p1437_p1 = pnand %p1436_p0, %p1435_p13 }
  0x1a   : > { %p1438_p2 = pneg %p1437_p1 }
  0x1c   : > { %p1443_p4 = pnand %p1441_p3, %p1438_p2 }
  0x1e   : > { %1446 = shalt.err (!%p1443_p4)
}
  0x1f   : > { %s1447_s18 = scalar_lea.vmem %s241_s19, 128  ;;  %p1455_p9 = scmp.lt.s32.totalorder %s241_s19, %s241_s19 }
  0x20   : > { %p1448_p7 = scmp.ne.s32.totalorder %s241_s19, %s1447_s18  ;;  %p1456_p6 = scmp.lt.s32.totalorder %s1447_s18, %s1447_s18 }
  0x22   : > { %p1450_p8 = pnand %p1448_p7, %p1436_p0  ;;  %p1457_p5 = por %p1456_p6, %p1455_p9 }
  0x24   : > { %p1451_p11 = pneg %p1450_p8 }
  0x26   : > { %p1458_p10 = pnand %p1457_p5, %p1451_p11 }
  0x28   : > { %1461 = shalt.err (!%p1458_p10)
}
  0x29   : > { %1374 = dma.hbm_to_vmem [thread:$0]  (!%p1676_p12), %s2056_s0, 128, %s241_s19, [#allocation3]  }
  0x2a   : > { %s1462_s26 = scalar_lea.hbm %s2058_s2, 192 }
  0x2b   : > { %p1463_p13 = scmp.ne.s32.totalorder %s2058_s2, %s1462_s26  ;;  %p1469_p9 = scmp.lt.u32.totalorder %s1462_s26, %s2058_s2 }
  0x2d   : > { %p1465_p6 = pnand %p1463_p13, %p1436_p0 }
  0x2f   : > { %p1466_p5 = pneg %p1465_p6 }
  0x31   : > { %p1471_p10 = pnand %p1469_p9, %p1466_p5 }
  0x33   : > { %1474 = shalt.err (!%p1471_p10)
}
  0x34   : > { %s1475_s19 = scalar_lea.vmem %s1680_s21, 192  ;;  %p1483_p4 = scmp.lt.s32.totalorder %s1680_s21, %s1680_s21 }
  0x35   : > { %p1476_p1 = scmp.ne.s32.totalorder %s1680_s21, %s1475_s19  ;;  %p1484_p7 = scmp.lt.s32.totalorder %s1475_s19, %s1475_s19 }
  0x37   : > { %p1478_p2 = pnand %p1476_p1, %p1436_p0  ;;  %p1485_p8 = por %p1484_p7, %p1483_p4 }
  0x39   : > { %p1479_p3 = pneg %p1478_p2 }
  0x3b   : > { %p1486_p11 = pnand %p1485_p8, %p1479_p3 }
  0x3d   : > { %1489 = shalt.err (!%p1486_p11)
}
  0x3e   : > { %s1564_s20 = smov 64   ;;  %s1565_s23 = smov 4  }
  0x3f   : > { %1377 = dma.hbm_to_vmem [thread:$0]  (!%p1676_p12), %s2058_s2, 192, %s1680_s21, [#allocation6], %s1564_s20, %s1564_s20, %s1565_s23  }
  0x40   : > { %p2072_p13 = scmp.ne.s32.totalorder %s2070_s17, 0 }
  0x41   : > { %p2073_p0 = scmp.eq.s32.totalorder (!%p2072_p13), %s1640_s9, 0 }
  0x42   : > { %290 = sbr.rel (%p2072_p13) target bundleno = 1270 (0x4f6), region = 52 }
  0x49   : > { %1535 = dma.done.wait (%p2073_p0), [#allocation3], 128   ;;  %p2074_p6 = pmov %p2073_p0 }
  0x4a   : > { %p2075_p5 = pmov %p2073_p0 }
  0x4b   : > { %1537 = vsyncadd (%p2074_p6), [#allocation3], 4294967168 }
  0x4c   : > { %1539 = dma.done.wait (%p2075_p5), [#allocation6], 192   ;;  %p2076_p9 = pmov %p2073_p0 }
  0x4d   : > { %s1286_s22 = sshll.u32 %s1640_s9, 1  ;;  %s1566_s12 = smov 16   ;;  %v350_v2 = vlaneseq  ;;  %v339_v7 = vld [vmem:[#allocation2 + $0x2] ss:$4 sm:$0x3]  ;;  %v1570_v8 = vmov 0.0  }
  0x4e   : > { %1541 = vsyncadd (%p2076_p9), [#allocation6], 4294967104  ;;  %p329_p10 = scmp.lt.s32.totalorder %s1286_s22, 3  ;;  %s1567_s13 = smov 112   ;;  %514 = vmatprep.mubr.f32.mxu0 %v1570_v8  ;;  %871 = vmatprep.mubr.f32.mxu1 %v1570_v8  ;;  %vm414_vm4 = vcmask 1043456   ;;  %vm1571_vm5 = vmmov 1  }
  0x4f   : > { %s1568_s18 = smov 1   ;;  %s1569_s19 = smov 127   ;;  %v357_v3 = vshrl.u32 %v350_v2, 7  ;;  %v1765_v4 = vand.u32 127, %v350_v2  ;;  %vm1831_vm6 = vmpackc.low %vm414_vm4, %vm1571_vm5  ;;  %v1572_v50 = vmov 0   ;;  %vm440_vm7 = vcmask 97280  }
  0x50   : > { %s2086_s22 = smov (!%p329_p10, %s1286_s22), 3  ;;  %v335_v13 = vld [vmem:[#allocation2] ss:$4 sm:$0x3]  ;;  %1430 = vset.pattern.permute.xlu0 %v1572_v50  ;;  %1431 = vset.pattern.permute.xlu1 %v1572_v50  ;;  %v439_v51 = vld [vmem:[#allocation5 + $0x4] sm:$0xf] }
  0x51   : > { %s1287_s21 = sshll.u32 %s2086_s22, 2  ;;  %v358_v5 = vsub.s32 0, %v357_v3  ;;  %v362_v6 = vsub.s32 1, %v357_v3  ;;  %vm352_vm0 = vcmp.lt.s32.totalorder %v1765_v4, 16  ;;  %vm372_vm1 = vcmp.lt.s32.totalorder %v1765_v4, 1  ;;  %s325_s23 = sand.u32 1, %s1552_s28  }
  0x52   : > { %s332_s10 = scalar_lea.vmem %s2057_s1, %s1287_s21  ;;  %v341_v18 = vld [vmem:[#allocation2 + $0x3] ss:$4 sm:$0x3]  ;;  %v337_v23 = vld [vmem:[#allocation2 + $0x1] ss:$4 sm:$0x3] }
  0x53   : > { %v1743_v0 = vld [vmem:[%s332_s10] sm:$0xff]  ;;  %v1770_v11 = vrot.slane %v339_v7, %v358_v5  ;;  %v1772_v12 = vrot.slane %v339_v7, %v362_v6  ;;  %v1785_v21 = vrot.slane %v335_v13, %v358_v5  ;;  %v1787_v22 = vrot.slane %v335_v13, %v362_v6  ;;  %s1285_s24 = sshll.u32 %s325_s23, 3  ;;  %s1316_s25 = sshll.u32 %s1640_s9, 7 }
  0x54   : > { %346 = vrot.lane.b32.xlu0 %v1743_v0, %s1566_s12  ;;  %601 = vrot.lane.b32.xlu1 %v1743_v0, %s1567_s13  ;;  %v1751_v1 = vcombine.high %v1743_v0, %v1743_v0  ;;  %vm392_vm2 = vcmp.lt.s32.totalorder %v1765_v4, 127  ;;  %vm605_vm3 = vcmp.lt.s32.totalorder %v1765_v4, 112  ;;  %v1791_v24 = vrot.slane %v341_v18, %v358_v5  ;;  %v729_v52 = vld [vmem:[%s2059_s3] sm:$0xf]  ;;  %v1304_v4 = vld [vmem:[%s2060_s4 + $0x8] sm:$0xf]  ;;  %s2014_s10 = scalar_lea.hbm %s2064_s8, %s1316_s25 }
  0x55   : > { %v1793_v25 = vrot.slane %v341_v18, %v362_v6  ;;  %v1803_v30 = vrot.slane %v337_v23, %v358_v5  ;;  %v434_v31 = vcombine.low %v1743_v0, %v1743_v0  ;;  %v1809_v34 = vrot.slane %v337_v23, %v362_v6  ;;  %s327_s22 = scalar_lea.vmem [#allocation7], %s1285_s24  ;;  %p2079_p1 = scmp.ne.s32.totalorder %s2068_s15, 0 }
  0x56   : > { %vm1091_vm8 = vcmask 31744   ;;  %s1196_s21 = sshll.u32 %s327_s22, 4  ;;  %s1573_s9 = smov [#allocation7]   ;;  %s2016_s21 = int_to_ptr.vmem [resolvable:$true] %s1196_s21 }
  0x58   : > { %348 = vrot.lane.b32.xlu0 %v1751_v1, %s1566_s12  ;;  %603 = vrot.lane.b32.xlu1 %v1751_v1, %s1567_s13 }
  0x5c   : > { %420 = vrot.lane.b32.xlu1 %v1751_v1, %s1568_s18  ;;  %418 = vrot.lane.b32.xlu0 %v1743_v0, %s1568_s18 }
  0x60   : > { %428 = vrot.lane.b32.xlu1 %v1751_v1, %s1569_s19  ;;  %426 = vrot.lane.b32.xlu0 %v1743_v0, %s1569_s19 }
  0xc6   : > { %v347_v9 = vpop.permute.xlu0 %346  ;;  %v602_v10 = vpop.permute.xlu1 %601 }
  0xca   : > { %v349_v14 = vpop.permute.xlu0 %348  ;;  %v604_v15 = vpop.permute.xlu1 %603 }
  0xcb   : > { %v353_v16 = vsel %vm352_vm0, %v347_v9, %v349_v14  ;;  %v354_v17 = vsel %vm352_vm0, %v349_v14, %v347_v9  ;;  %v606_v35 = vsel %vm605_vm3, %v602_v10, %v604_v15  ;;  %v607_v36 = vsel %vm605_vm3, %v604_v15, %v602_v10 }
  0xcc   : > { %v1780_v19 = vmul.f32 %v1770_v11, %v354_v17  ;;  %v1783_v20 = vmul.f32 %v1772_v12, %v353_v16  ;;  %v619_v43 = vmul.f32 %v1791_v24, %v606_v35  ;;  %v620_v44 = vmul.f32 %v1793_v25, %v607_v36 }
  0xce   : > { %370 = vrot.lane.b32.xlu1 %v1783_v20, %s1568_s18  ;;  %368 = vrot.lane.b32.xlu0 %v1780_v19, %s1568_s18  ;;  %v421_v26 = vpop.permute.xlu1 %420  ;;  %v419_v27 = vpop.permute.xlu0 %418  ;;  %v410_v61 = vrot.slane %v1780_v19, 4  ;;  %v411_v62 = vrot.slane %v1783_v20, 4 }
  0xcf   : > { %v422_v28 = vsel %vm372_vm1, %v419_v27, %v421_v26  ;;  %v423_v29 = vsel %vm372_vm1, %v421_v26, %v419_v27  ;;  %v639_v26 = vrot.slane %v619_v43, 4  ;;  %v640_v27 = vrot.slane %v620_v44, 4 }
  0xd0   : > { %v424_v32 = vmul.f32 %v423_v29, %v1785_v21  ;;  %v425_v33 = vmul.f32 %v422_v28, %v1787_v22 }
  0xd2   : > { %390 = vrot.lane.b32.xlu1 %v1783_v20, %s1569_s19  ;;  %388 = vrot.lane.b32.xlu0 %v1780_v19, %s1569_s19  ;;  %v429_v37 = vpop.permute.xlu1 %428  ;;  %v427_v38 = vpop.permute.xlu0 %426  ;;  %v437_v41 = vsel %vm414_vm4, %v425_v33, %v1743_v0  ;;  %v436_v42 = vsel %vm414_vm4, %v424_v32, %v434_v31  ;;  %v417_v19 = vld [vmem:[#allocation5] sm:$0xf] }
  0xd3   : > { %v430_v39 = vsel %vm392_vm2, %v427_v38, %v429_v37  ;;  %v431_v40 = vsel %vm392_vm2, %v429_v37, %v427_v38  ;;  %v646_v38 = vld [vmem:[#allocation5 + $0x8] sm:$0xf] }
  0xd4   : > { %v432_v45 = vmul.f32 %v430_v39, %v1803_v30  ;;  %v433_v46 = vmul.f32 %v431_v40, %v1809_v34 }
  0xd6   : > { %623 = vrot.lane.b32.xlu1 %v620_v44, %s1568_s18  ;;  %621 = vrot.lane.b32.xlu0 %v619_v43, %s1568_s18  ;;  %v1317_v48 = vpack.c.bf16 %v433_v46, %v437_v41  ;;  %v1320_v49 = vpack.c.bf16 %v432_v45, %v436_v42 }
  0xd8   : > { %1319 = vmatprep.subr.msk.bf16.mxu0 %vm1831_vm6, %v1317_v48 }
  0xd9   : > { %1322 = vmatpush1.bf16.msk.msra.mxu0 %vm1831_vm6, %v1320_v49 }
  0xda   : > { %631 = vrot.lane.b32.xlu1 %v620_v44, %s1569_s19  ;;  %629 = vrot.lane.b32.xlu0 %v619_v43, %s1569_s19 }
  0xdc   : > { %1290 = vmatmul.mubr.msk.f32.vlgmr.msra.gmra.mrb[0].mxu0 %vm440_vm7, %v439_v51 }
  0xdd   : > { %594 = vmatprep.mubr.f32.mxu0 %v1570_v8 }
  0xde   : > { %732 = vperm.xlu0 %1430, %v729_v52  }
 0x140   : > { %v371_v53 = vpop.permute.xlu1 %370  ;;  %v369_v54 = vpop.permute.xlu0 %368 }
 0x141   : > { %v373_v55 = vsel %vm372_vm1, %v369_v54, %v371_v53  ;;  %v374_v56 = vsel %vm372_vm1, %v371_v53, %v369_v54 }
 0x142   : > { %v386_v57 = vmul.f32 %v1785_v21, %v374_v56  ;;  %v387_v58 = vmul.f32 %v1787_v22, %v373_v55 }
 0x144   : > { %v391_v59 = vpop.permute.xlu1 %390  ;;  %v389_v60 = vpop.permute.xlu0 %388  ;;  %v415_v6 = vsel %vm414_vm4, %v386_v57, %v410_v61  ;;  %v416_v7 = vsel %vm414_vm4, %v387_v58, %v411_v62 }
 0x145   : > { %v393_v63 = vsel %vm392_vm2, %v389_v60, %v391_v59  ;;  %v394_v2 = vsel %vm392_vm2, %v391_v59, %v389_v60 }
 0x146   : > { %v406_v3 = vmul.f32 %v1803_v30, %v393_v63  ;;  %v407_v5 = vmul.f32 %v1809_v34, %v394_v2 }
 0x148   : > { %v1323_v9 = vpack.c.bf16 %v407_v5, %v416_v7  ;;  %v1326_v10 = vpack.c.bf16 %v406_v3, %v415_v6  ;;  %v624_v13 = vpop.permute.xlu1 %623  ;;  %v622_v14 = vpop.permute.xlu0 %621 }
 0x149   : > { %v625_v15 = vsel %vm372_vm1, %v622_v14, %v624_v13  ;;  %v626_v16 = vsel %vm372_vm1, %v624_v13, %v622_v14 }
 0x14a   : > { %1325 = vmatprep.subr.msk.bf16.mxu0 %vm1831_vm6, %v1323_v9  ;;  %v627_v17 = vmul.f32 %v626_v16, %v1785_v21  ;;  %v628_v18 = vmul.f32 %v625_v15, %v1787_v22  ;;  %v1074_v15 = vld [vmem:[%s2061_s5] sm:$0xf]  ;;  %v1297_v16 = vld [vmem:[%s2060_s4 + $0x4] sm:$0xf] }
 0x14b   : > { %1328 = vmatpush1.bf16.msk.msra.mxu0 %vm1831_vm6, %v1326_v10 }
 0x14c   : > { %v632_v20 = vpop.permute.xlu1 %631  ;;  %v630_v23 = vpop.permute.xlu0 %629  ;;  %v643_v33 = vsel %vm414_vm4, %v627_v17, %v639_v26  ;;  %v644_v35 = vsel %vm414_vm4, %v628_v18, %v640_v27 }
 0x14d   : > { %v633_v28 = vsel %vm392_vm2, %v630_v23, %v632_v20  ;;  %v634_v29 = vsel %vm392_vm2, %v632_v20, %v630_v23 }
 0x14e   : > { %v635_v31 = vmul.f32 %v633_v28, %v1803_v30  ;;  %v636_v32 = vmul.f32 %v634_v29, %v1809_v34  ;;  %1293 = vmatmul.mubr.msk.f32.vlgmr.msra.gmra.mrb[0].mxu0 %vm440_vm7, %v417_v19 }
 0x14f   : > { %720 = vmatprep.mubr.f32.mxu0 %v1570_v8 }
 0x150   : > { %v1329_v36 = vpack.c.bf16 %v636_v32, %v644_v35  ;;  %v1332_v37 = vpack.c.bf16 %v635_v31, %v643_v33 }
 0x152   : > { %1331 = vmatprep.subr.msk.bf16.mxu0 %vm1831_vm6, %v1329_v36 }
 0x153   : > { %1334 = vmatpush1.bf16.msk.msra.mxu0 %vm1831_vm6, %v1332_v37 }
 0x156   : > { %1296 = vmatmul.mubr.msk.f32.vlgmr.msra.gmra.mrb[0].mxu0 %vm440_vm7, %v646_v38 }
 0x157   : > { %1165 = vmatprep.mubr.f32.mxu0 %v1570_v8 }
 0x15d   : > { %v733_v39 = vpop.permute.xlu0 %732 }
 0x229   : > { %v722_v40 = vpop.f32.mrb[0].mxu0 }
 0x22a   : > { %v735_v41 = vadd.f32 %v733_v39, %v722_v40  ;;  %v724_v42 = vpop.f32.mrb[1].mxu0 }
 0x22b   : > { %v736_v44 = vadd.f32 %v733_v39, %v724_v42 }
 0x22c   : > { %v737_v43 = vmax.f32 %v735_v41, 0.0 }
 0x22d   : > { %v738_v45 = vmax.f32 %v736_v44, 0.0 }
 0x22e   : > { %958 = vrot.lane.b32.xlu0 %v737_v43, %s1567_s13  ;;  %739 = vrot.lane.b32.xlu1 %v737_v43, %s1566_s12  ;;  %v790_v5 = vrot.slane %v737_v43, 4 }
 0x232   : > { %772 = vrot.lane.b32.xlu0 %v737_v43, %s1568_s18  ;;  %741 = vrot.lane.b32.xlu1 %v738_v45, %s1566_s12  ;;  %s1182_s12 = scalar_lea.sflag [#allocation4], %s325_s23 }
 0x236   : > { %780 = vrot.lane.b32.xlu0 %v737_v43, %s1569_s19  ;;  %960 = vrot.lane.b32.xlu1 %v738_v45, %s1567_s13  ;;  %s1490_s13 = scalar_lea.vmem %s2016_s21, 128 }
 0x237   : > { %p1491_p12 = scmp.ne.s32.totalorder %s2016_s21, %s1490_s13 }
 0x239   : > { %p1492_p2 = pnand %p1491_p12, %p2079_p1 }
 0x23a   : > { %774 = vrot.lane.b32.xlu1 %v738_v45, %s1568_s18 }
 0x23b   : > { %p1493_p3 = pneg %p1492_p2 }
 0x23e   : > { %782 = vrot.lane.b32.xlu1 %v738_v45, %s1569_s19 }
 0x2a0   : > { %v740_v46 = vpop.permute.xlu1 %739  ;;  %v959_v48 = vpop.permute.xlu0 %958 }
 0x2a4   : > { %v742_v49 = vpop.permute.xlu1 %741  ;;  %v773_v55 = vpop.permute.xlu0 %772 }
 0x2a5   : > { %v743_v50 = vsel %vm352_vm0, %v740_v46, %v742_v49  ;;  %v744_v51 = vsel %vm352_vm0, %v742_v49, %v740_v46 }
 0x2a6   : > { %v745_v52 = vmul.f32 %v744_v51, %v1770_v11  ;;  %v746_v53 = vmul.f32 %v743_v50, %v1772_v12 }
 0x2a8   : > { %747 = vrot.lane.b32.xlu0 %v745_v52, %s1568_s18  ;;  %749 = vrot.lane.b32.xlu1 %v746_v53, %s1568_s18  ;;  %v961_v54 = vpop.permute.xlu1 %960  ;;  %v781_v63 = vpop.permute.xlu0 %780  ;;  %v765_v29 = vrot.slane %v745_v52, 4  ;;  %v766_v31 = vrot.slane %v746_v53, 4 }
 0x2a9   : > { %v962_v56 = vsel %vm605_vm3, %v959_v48, %v961_v54  ;;  %v963_v57 = vsel %vm605_vm3, %v961_v54, %v959_v48  ;;  %v771_v48 = vld [vmem:[%s2060_s4] sm:$0xf] }
 0x2aa   : > { %v1917_v59 = vmul.f32 %v962_v56, %v1791_v24  ;;  %v1920_v60 = vmul.f32 %v963_v57, %v1793_v25  ;;  %v791_v25 = vrot.slane %v738_v45, 4 }
 0x2ac   : > { %755 = vrot.lane.b32.xlu0 %v745_v52, %s1569_s19  ;;  %757 = vrot.lane.b32.xlu1 %v746_v53, %s1569_s19  ;;  %v775_v58 = vpop.permute.xlu1 %774  ;;  %v984_v51 = vrot.slane %v1917_v59, 4  ;;  %v985_v52 = vrot.slane %v1920_v60, 4 }
 0x2ad   : > { %v776_v11 = vsel %vm372_vm1, %v773_v55, %v775_v58  ;;  %v777_v12 = vsel %vm372_vm1, %v775_v58, %v773_v55 }
 0x2ae   : > { %v778_v61 = vmul.f32 %v777_v12, %v1785_v21  ;;  %v779_v62 = vmul.f32 %v776_v11, %v1787_v22 }
 0x2b0   : > { %968 = vrot.lane.b32.xlu1 %v1920_v60, %s1568_s18  ;;  %966 = vrot.lane.b32.xlu0 %v1917_v59, %s1568_s18  ;;  %v783_v2 = vpop.permute.xlu1 %782  ;;  %v795_v9 = vsel %vm414_vm4, %v779_v62, %v791_v25  ;;  %v794_v10 = vsel %vm414_vm4, %v778_v61, %v790_v5  ;;  %v1084_v61 = vld [vmem:[%s2062_s6] sm:$0xf]  ;;  %s1494_s18 = sshll.u32 %s1573_s9, 4  ;;  %s1495_s18 = int_to_ptr.vmem [resolvable:$false] %s1494_s18 }
 0x2b1   : > { %v784_v3 = vsel %vm392_vm2, %v781_v63, %v783_v2  ;;  %v785_v24 = vsel %vm392_vm2, %v783_v2, %v781_v63  ;;  %p1497_p4 = scmp.lt.s32.totalorder %s2016_s21, %s1495_s18 }
 0x2b2   : > { %v786_v6 = vmul.f32 %v784_v3, %v1803_v30  ;;  %v787_v7 = vmul.f32 %v785_v24, %v1809_v34 }
 0x2b4   : > { %976 = vrot.lane.b32.xlu1 %v1920_v60, %s1569_s19  ;;  %974 = vrot.lane.b32.xlu0 %v1917_v59, %s1569_s19  ;;  %v1335_v13 = vpack.c.bf16 %v787_v7, %v795_v9  ;;  %v1338_v14 = vpack.c.bf16 %v786_v6, %v794_v10  ;;  %s1496_s19 = scalar_lea.vmem %s1495_s18, 256 }
 0x2b5   : > { %p1498_p7 = scmp.lt.s32.totalorder %s1496_s19, %s1490_s13 }
 0x2b6   : > { %1337 = vmatprep.subr.msk.bf16.mxu1 %vm1831_vm6, %v1335_v13 }
 0x2b7   : > { %1340 = vmatpush1.bf16.msk.msra.mxu1 %vm1831_vm6, %v1338_v14  ;;  %p1499_p8 = por %p1498_p7, %p1497_p4 }
 0x2b8   : > { %1077 = vperm.xlu0 %1430, %v1074_v15  }
 0x2b9   : > { %p1500_p11 = pnand %p1499_p8, %p1493_p3 }
 0x2ba   : > { %1300 = vmatmul.mubr.msk.f32.vlgmr.msra.gmra.mrb[0].mxu1 %vm440_vm7, %v1297_v16 }
 0x2bb   : > { %951 = vmatprep.mubr.f32.mxu1 %v1570_v8 }
 0x31a   : > { %v748_v17 = vpop.permute.xlu0 %747  ;;  %v750_v18 = vpop.permute.xlu1 %749 }
 0x31b   : > { %v751_v19 = vsel %vm372_vm1, %v748_v17, %v750_v18  ;;  %v752_v20 = vsel %vm372_vm1, %v750_v18, %v748_v17 }
 0x31c   : > { %v753_v23 = vmul.f32 %v752_v20, %v1785_v21  ;;  %v754_v26 = vmul.f32 %v751_v19, %v1787_v22 }
 0x31e   : > { %v756_v27 = vpop.permute.xlu0 %755  ;;  %v758_v28 = vpop.permute.xlu1 %757  ;;  %v769_v37 = vsel %vm414_vm4, %v753_v23, %v765_v29  ;;  %v770_v38 = vsel %vm414_vm4, %v754_v26, %v766_v31 }
 0x31f   : > { %v759_v32 = vsel %vm392_vm2, %v756_v27, %v758_v28  ;;  %v760_v33 = vsel %vm392_vm2, %v758_v28, %v756_v27 }
 0x320   : > { %v761_v35 = vmul.f32 %v759_v32, %v1803_v30  ;;  %v762_v36 = vmul.f32 %v760_v33, %v1809_v34 }
 0x322   : > { %v1341_v39 = vpack.c.bf16 %v762_v36, %v770_v38  ;;  %v1344_v40 = vpack.c.bf16 %v761_v35, %v769_v37  ;;  %v967_v41 = vpop.permute.xlu0 %966  ;;  %v969_v42 = vpop.permute.xlu1 %968 }
 0x323   : > { %v970_v43 = vsel %vm372_vm1, %v967_v41, %v969_v42  ;;  %v971_v44 = vsel %vm372_vm1, %v969_v42, %v967_v41 }
 0x324   : > { %1343 = vmatprep.subr.msk.bf16.mxu1 %vm1831_vm6, %v1341_v39  ;;  %v972_v45 = vmul.f32 %v971_v44, %v1785_v21  ;;  %v973_v46 = vmul.f32 %v970_v43, %v1787_v22 }
 0x325   : > { %1346 = vmatpush1.bf16.msk.msra.mxu1 %vm1831_vm6, %v1344_v40 }
 0x326   : > { %v975_v49 = vpop.permute.xlu0 %974  ;;  %v977_v50 = vpop.permute.xlu1 %976  ;;  %v988_v55 = vsel %vm414_vm4, %v972_v45, %v984_v51  ;;  %v989_v56 = vsel %vm414_vm4, %v973_v46, %v985_v52 }
 0x327   : > { %v978_v53 = vsel %vm392_vm2, %v975_v49, %v977_v50  ;;  %v979_v21 = vsel %vm392_vm2, %v977_v50, %v975_v49 }
 0x328   : > { %v980_v22 = vmul.f32 %v978_v53, %v1803_v30  ;;  %v981_v54 = vmul.f32 %v979_v21, %v1809_v34  ;;  %1303 = vmatmul.mubr.msk.f32.vlgmr.msra.gmra.mrb[0].mxu1 %vm440_vm7, %v771_v48  ;;  %v1085_v30 = vld [vmem:[%s2063_s7] sm:$0xf] }
 0x329   : > { %1065 = vmatprep.mubr.f32.mxu1 %v1570_v8  ;;  %1088 = vperm.xlu1 %1431, %v1085_v30  }
 0x32a   : > { %v1347_v57 = vpack.c.bf16 %v981_v54, %v989_v56  ;;  %v1350_v58 = vpack.c.bf16 %v980_v22, %v988_v55 }
 0x32c   : > { %1349 = vmatprep.subr.msk.bf16.mxu1 %vm1831_vm6, %v1347_v57 }
 0x32d   : > { %1352 = vmatpush1.bf16.msk.msra.mxu1 %vm1831_vm6, %v1350_v58 }
 0x330   : > { %1307 = vmatmul.mubr.msk.f32.vlgmr.msra.gmra.mrb[0].mxu1 %vm440_vm7, %v1304_v4 }
 0x337   : > { %v1078_v8 = vpop.permute.xlu0 %1077 }
 0x3a8   : > { %v1089_v62 = vpop.permute.xlu1 %1088 }
 0x403   : > { %v1067_v34 = vpop.f32.mrb[0].mxu1 }
 0x404   : > { %v1080_v11 = vadd.f32 %v1078_v8, %v1067_v34  ;;  %v1069_v12 = vpop.f32.mrb[1].mxu1 }
 0x405   : > { %v1081_v59 = vadd.f32 %v1078_v8, %v1069_v12 }
 0x406   : > { %v1082_v47 = vmax.f32 %v1080_v11, 0.0 }
 0x407   : > { %v1083_v60 = vmax.f32 %v1081_v59, 0.0 }
 0x409   : > { %1308 = vmatprep.subr.msk.mxu0 %vm414_vm4, %v1083_v60 }
 0x40a   : > { %1309 = vmatpush1.msk.msra.mxu0 %vm414_vm4, %v1082_v47 }
 0x40b   : > { %1310 = vmatmul.mubr.msk.f32.vlgmr.msra.gmra.mrb[2].mxu0 %vm1091_vm8, %v1084_v61 }
 0x4de   : > { %v1167_v63 = vpop.f32.mrb[2].mxu0 }
 0x4df   : > { %v1168_v2 = vadd.f32 %v1167_v63, %v1089_v62  ;;  %v1169_v3 = vpop.f32.mrb[3].mxu0 }
 0x4e0   : > { %v1170_v24 = vadd.f32 %v1169_v3, %v1089_v62 }
 0x4e1   : > { %v1172_v25 = vadd.f32 %v1168_v2, %v1743_v0 }
 0x4e2   : > { %v1173_v5 = vadd.f32 %v1170_v24, %v1751_v1 }
 0x4e3   : > { %v1174_v6 = vmax.f32 %v1172_v25, 0.0 }
 0x4e4   : > { %v1175_v7 = vmax.f32 %v1173_v5, 0.0 }
 0x4e6   : > { %v1178_v9 = vcombine.low %v1174_v6, %v1175_v7 }
 0x4e8   : > { %1180 = vst [vmem:[%s327_s22] sm:$0xff] %v1178_v9 }
 0x4e9   : > { %1503 = shalt.err (!%p1500_p11)
}
 0x4ea   : > { %s1504_s20 = scalar_lea.hbm %s2014_s10, 128  ;;  %s1508_s25 = scalar_lea.hbm %s2064_s8, 256 }
 0x4eb   : > { %p1505_p13 = scmp.ne.s32.totalorder %s2014_s10, %s1504_s20  ;;  %p1509_p5 = scmp.lt.u32.totalorder %s2014_s10, %s2064_s8 }
 0x4ec   : > { %p1510_p9 = scmp.lt.u32.totalorder %s1508_s25, %s1504_s20  ;;  %p1512_p12 = scmp.lt.u32.totalorder %s1504_s20, %s2014_s10 }
 0x4ed   : > { %p1506_p0 = pnand %p1505_p13, %p2079_p1 }
 0x4ee   : > { %p1511_p10 = por %p1510_p9, %p1509_p5 }
 0x4ef   : > { %p1507_p6 = pneg %p1506_p0 }
 0x4f0   : > { %p1513_p2 = por %p1512_p12, %p1511_p10 }
 0x4f2   : > { %p1514_p3 = pnand %p1513_p2, %p1507_p6 }
 0x4f4   : > { %1517 = shalt.err (!%p1514_p3)
}
 0x4f5   : > { %1369 = dma.vmem_to_hbm [thread:$0]  (%p2079_p1), %s2016_s21, 128, %s2014_s10, %s1182_s12  }
 0x4f6 PF: > { %p1386_p4 = scmp.ge.s32.totalorder %s1560_s30, 2  ;;  %s1208_s17 = sand.u32 1, %s1548_s27  }
 0x4f7   : > { %p2080_p7 = scmp.ne.s32.totalorder %s2069_s16, 0  ;;  %s1209_s13 = scalar_lea.sflag [#allocation4], %s1208_s17 }
 0x4f9   : > { %p1379_p8 = pnand %p1386_p4, %p2080_p7 }
 0x4fb   : > { %1543 = dma.done.wait (!%p1379_p8), %s1209_s13, 128  }
 0x4fc   : > { %1545 = vsyncadd (!%p1379_p8), %s1209_s13, 4294967168  ;;  %p20_p11 = scmp.ge.s32.totalorder %s1644_s11, 4   ;;  %s2081_s27 = smov %s1552_s28 }
 0x4fd   : > { %s2082_s28 = smov %s1556_s29  ;;  %s2083_s29 = smov %s1655_s14 }
 0x4fe   : > { %s2084_s30 = smov %s1644_s11  ;;  %22 = sbr.rel (!%p20_p11) target bundleno = 5 (0x5), region = 103 }
 0x505   :  { %1214 = vsyncpa [#allocation3], 1 }
 0x506   :  { %1216 = vsyncpa [#allocation3 + $0x1], 1 }
 0x507   :  { %1217 = vsyncpa [#allocation6], 1 }
 0x508   :  { %1218 = vsyncpa [#allocation4], 1 }
 0x509   :  { %1220 = vsyncpa [#allocation4 + $0x1], 1 }

</bundles_post_ra>
